<compile_context>
chip_gen: v6e
topology: v6e:2x2x1
jax: 0.10.0
libtpu: 0.0.40
codegen_flags: <defaults>
</compile_context>

<pallas_src>
import functools

import numpy as np
import jax
import jax.numpy as jnp
from jax import lax
from jax.experimental import pallas as pl
from jax.experimental.pallas import tpu as pltpu


# --------------------------------------------------------------------------- #
# Helpers
# --------------------------------------------------------------------------- #
def _round_up(x, m):
    return ((x + m - 1) // m) * m


def _tpu_vmem_capacity():
    try:
        return int(pltpu.get_tpu_info().vmem_capacity_bytes)
    except Exception:
        return 64 * 1024 * 1024  # conservative: v7x per-TensorCore VMEM


def _vmem_limit(step_bytes, vmem_cap):
    # 2x headroom over the estimated per-step footprint, but stay well inside the
    # physical per-core VMEM (64 MiB on v7x, 128 MiB on v5e/v6e).
    return int(min(max(2 * step_bytes, 32 * 1024 * 1024), int(0.85 * vmem_cap)))


def _pick_block(b, fits):
    """Largest divisor of b whose per-step footprint fits; capped at b//2 so the
    grid has at least two steps (keeps both v7x TensorCores busy)."""
    cap = b // 2 if b >= 2 else b
    best = 1
    for d in range(1, cap + 1):
        if b % d == 0 and fits(d):
            best = d
    return best


def _acc(acc, tap, patch):
    """Accumulate tap*patch with constant folding (skip 0, skip mul for +/-1)."""
    if tap == 0.0:
        return acc
    if acc is None:
        if tap == 1.0:
            return patch
        if tap == -1.0:
            return -patch
        return tap * patch
    if tap == 1.0:
        return acc + patch
    if tap == -1.0:
        return acc - patch
    return acc + tap * patch


# --------------------------------------------------------------------------- #
# Phase 1: channel mean + both valid convolutions (x_kernel and x_kernel^T) on
#          the lane-flattened image -> masked G maps + per-image sums of n.
# --------------------------------------------------------------------------- #
def _phase1_kernel(taps, inv_c, mask_ref, im1_ref, im2_ref,
                   g1_ref, g2_ref, s1_ref, s2_ref):
    hwp = im1_ref.shape[-1]
    valid = mask_ref[...]                                  # (1, hwp) f32 0/1

    def one_image(im_ref, g_ref, s_ref):
        # Channel mean: sum over C (middle dim), constant 1/C multiply.
        img = jnp.sum(im_ref[...], axis=1) * inv_c         # (bt, hwp), lane-dense
        gx = gy = None
        for d, tx, ty in taps:                             # taps baked as constants
            # patch[p] = img[p + d]; wrap-around only hits masked-out positions.
            patch = img if d == 0 else pltpu.roll(img, hwp - d, axis=1)
            gx = _acc(gx, tx, patch)
            gy = _acc(gy, ty, patch)
        if gx is None:
            gx = jnp.zeros_like(img)
        if gy is None:
            gy = jnp.zeros_like(img)
        n = (gx * gx + gy * gy) * valid                    # 0 on pad / invalid
        s_ref[...] = jnp.sum(n, axis=1, keepdims=True)     # (bt, 1)
        g_ref[...] = jnp.sqrt(n + 1e-10) * valid           # G map, 0 where invalid

    one_image(im1_ref, g1_ref, s1_ref)
    one_image(im2_ref, g2_ref, s2_ref)


# --------------------------------------------------------------------------- #
# Phase 2: tanh products with the global norm factor -> per-image partial sums.
# --------------------------------------------------------------------------- #
def _phase2_kernel(nf_ref, g1_ref, g2_ref, part_ref):
    nf = nf_ref[0]
    inv_nf = nf_ref[1]
    prod = jnp.tanh(g1_ref[...] * inv_nf) * jnp.tanh(g2_ref[...] * nf)
    part_ref[...] = jnp.sum(prod * prod, axis=1, keepdims=True)


# --------------------------------------------------------------------------- #
# Wrapper
# --------------------------------------------------------------------------- #
def mutex_loss(im1, im2, x_kernel):
    # x_kernel taps are folded into the kernel as compile-time constants, so it
    # must be concrete (close over it; do not pass it as a traced jit argument).
    kx = np.asarray(jax.device_get(x_kernel), dtype=np.float32)
    kx = kx.reshape(kx.shape[-2], kx.shape[-1])
    kh, kw = kx.shape
    if kh != kw:
        raise ValueError("x_kernel must be square (required by the PyTorch module).")

    im1 = im1.astype(jnp.float32)
    im2 = im2.astype(jnp.float32)
    b, c, h, w = im1.shape
    ho, wo = h - kh + 1, w - kw + 1
    hw = h * w
    hwp = _round_up(hw, 128)                 # lane-dense flattened spatial axis

    # Flatten (H, W) into the lane axis; pad to a multiple of 128 (no-op if aligned).
    im1f = im1.reshape(b, c, hw)
    im2f = im2.reshape(b, c, hw)
    if hwp != hw:
        pad = ((0, 0), (0, 0), (0, hwp - hw))
        im1f = jnp.pad(im1f, pad)
        im2f = jnp.pad(im2f, pad)

    # Validity mask (valid conv-output positions of the flattened map), precomputed
    # on the host so the kernel needs no integer div/mod.
    pos = np.arange(hwp)
    valid_np = ((pos // w < ho) & (pos % w < wo) & (pos < hw)).astype(np.float32)
    valid = jnp.asarray(valid_np.reshape(1, hwp))

    # Conv taps for x_kernel and its transpose as Python constants; skip all-zero taps.
    taps = []
    for di in range(kh):
        for dj in range(kw):
            tx = float(kx[di, dj])           # x_kernel tap
            ty = float(kx[dj, di])           # y_kernel = x_kernel^T tap
            if tx != 0.0 or ty != 0.0:
                taps.append((di * w + dj, tx, ty))
    taps = tuple(taps)
    inv_c = 1.0 / float(c)

    vmem_cap = _tpu_vmem_capacity()

    # ---- phase 1: batch-block size & VMEM budget ----------------------------
    def p1_step_bytes(bt):
        map_b = bt * hwp * 4
        in_b = 2 * bt * c * hwp * 4                       # both input blocks
        return 2 * in_b + 2 * (2 * map_b + 16 * bt) + 12 * map_b

    bt = _pick_block(b, lambda x: p1_step_bytes(x) <= int(0.45 * vmem_cap))
    nb1 = b // bt
    # TODO(synk): add H-tiling with a (kh-1) halo for single images too large to
    # fit VMEM even at bt=1.

    g1m, g2m, s1, s2 = pl.pallas_call(
        functools.partial(_phase1_kernel, taps, inv_c),
        out_shape=(jax.ShapeDtypeStruct((nb1, bt, hwp), jnp.float32),
                   jax.ShapeDtypeStruct((nb1, bt, hwp), jnp.float32),
                   jax.ShapeDtypeStruct((nb1, bt, 1), jnp.float32),
                   jax.ShapeDtypeStruct((nb1, bt, 1), jnp.float32)),
        grid_spec=pltpu.PrefetchScalarGridSpec(
            num_scalar_prefetch=0,
            grid=(nb1,),
            in_specs=[pl.BlockSpec((1, hwp), lambda i: (0, 0)),
                      pl.BlockSpec((bt, c, hwp), lambda i: (i, 0, 0)),
                      pl.BlockSpec((bt, c, hwp), lambda i: (i, 0, 0))],
            out_specs=[pl.BlockSpec((None, bt, hwp), lambda i: (i, 0, 0)),
                       pl.BlockSpec((None, bt, hwp), lambda i: (i, 0, 0)),
                       pl.BlockSpec((None, bt, 1), lambda i: (i, 0, 0)),
                       pl.BlockSpec((None, bt, 1), lambda i: (i, 0, 0))]),
        compiler_params=pltpu.CompilerParams(
            dimension_semantics=("parallel",),
            vmem_limit_bytes=_vmem_limit(p1_step_bytes(bt), vmem_cap)),
    )(valid, im1f, im2f)

    # ---- tiny scalar glue: the global reduction between the two phases ------
    n1_s = jnp.sqrt(jnp.sum(s1) + 1e-10)
    n2_s = jnp.sqrt(jnp.sum(s2) + 1e-10)
    nf = jnp.sqrt((n1_s + 1e-10) / (n2_s + 1e-10))
    nf_vec = jnp.stack([nf, 1.0 / nf]).astype(jnp.float32)     # [nf, 1/nf] -> SMEM

    # ---- phase 2: larger lane-dense blocks over the (C-times smaller) maps ---
    def p2_step_bytes(bt2):
        map_b = bt2 * hwp * 4
        return 2 * 2 * map_b + 6 * map_b + 16 * bt2

    bt2 = _pick_block(b, lambda x: p2_step_bytes(x) <= int(0.45 * vmem_cap))
    nb2 = b // bt2
    g1m = g1m.reshape(nb2, bt2, hwp)        # free reshapes (contiguous buffers)
    g2m = g2m.reshape(nb2, bt2, hwp)

    partials = pl.pallas_call(
        _phase2_kernel,
        out_shape=jax.ShapeDtypeStruct((nb2, bt2, 1), jnp.float32),
        grid_spec=pltpu.PrefetchScalarGridSpec(
            num_scalar_prefetch=0,
            grid=(nb2,),
            in_specs=[pl.BlockSpec(memory_space=pltpu.MemorySpace.SMEM),
                      pl.BlockSpec((None, bt2, hwp), lambda i: (i, 0, 0)),
                      pl.BlockSpec((None, bt2, hwp), lambda i: (i, 0, 0))],
            out_specs=pl.BlockSpec((None, bt2, 1), lambda i: (i, 0, 0))),
        compiler_params=pltpu.CompilerParams(
            dimension_semantics=("parallel",),
            vmem_limit_bytes=_vmem_limit(p2_step_bytes(bt2), vmem_cap)),
    )(nf_vec, g1m, g2m)

    # Padded / invalid positions carry G == 0 -> tanh products are exactly 0 there;
    # add the per-element 1e-10 only for the B*Ho*Wo real elements.
    return jnp.sqrt(jnp.sum(partials) + float(b * ho * wo) * 1e-10)


# --------------------------------------------------------------------------- #
# Pure-JAX reference reproducing the PyTorch forward exactly.
# --------------------------------------------------------------------------- #
def _reference_mutex_loss(im1, im2, x_kernel):
    x_kernel = jnp.asarray(x_kernel, jnp.float32)
    kx = x_kernel.reshape(1, 1, x_kernel.shape[-2], x_kernel.shape[-1])
    ky = jnp.swapaxes(kx, -1, -2)
    img1 = jnp.mean(im1.astype(jnp.float32), axis=1, keepdims=True)
    img2 = jnp.mean(im2.astype(jnp.float32), axis=1, keepdims=True)

    def conv(x, k):
        return lax.conv_general_dilated(
            x, k, window_strides=(1, 1), padding="VALID",
            dimension_numbers=("NCHW", "OIHW", "NCHW"),
            precision=lax.Precision.HIGHEST)

    gx1, gy1 = conv(img1, kx), conv(img1, ky)
    gx2, gy2 = conv(img2, kx), conv(img2, ky)
    n1 = gx1 ** 2 + gy1 ** 2
    n2 = gx2 ** 2 + gy2 ** 2
    g1 = jnp.sqrt(n1 + 1e-10)
    g2 = jnp.sqrt(n2 + 1e-10)
    n1_s = jnp.sqrt(jnp.sum(n1) + 1e-10)
    n2_s = jnp.sqrt(jnp.sum(n2) + 1e-10)
    nf = jnp.sqrt((n1_s + 1e-10) / (n2_s + 1e-10))
    gm1 = jnp.tanh(g1 / nf)
    gm2 = jnp.tanh(g2 * nf)
    return jnp.sqrt(jnp.sum((gm1 * gm2) ** 2 + 1e-10))


if __name__ == "__main__":
    key = jax.random.PRNGKey(0)
    k1, k2 = jax.random.split(key)
    B, C, H, W = 2, 4, 16, 16
    im1 = jax.random.normal(k1, (B, C, H, W), dtype=jnp.float32)
    im2 = 0.5 * jax.random.normal(k2, (B, C, H, W), dtype=jnp.float32) + 0.1
    # Sobel-x kernel in PyTorch conv2d weight layout (O, I, kh, kw).
    x_kernel = jnp.array([[-1.0, 0.0, 1.0],
                          [-2.0, 0.0, 2.0],
                          [-1.0, 0.0, 1.0]], dtype=jnp.float32).reshape(1, 1, 3, 3)

    # The conv taps are compile-time constants folded into the Pallas kernel, so
    # close over x_kernel instead of passing it as a traced jit argument.
    loss_fn = jax.jit(lambda a, b: mutex_loss(a, b, x_kernel))
    out = jax.block_until_ready(loss_fn(im1, im2))

    ref = _reference_mutex_loss(im1, im2, x_kernel)
    assert out.shape == ()
    assert jnp.allclose(out, ref, rtol=1e-4, atol=1e-5), (out, ref)
    print("KERNEL_OK")
</pallas_src>

<mosaic_0001>
module attributes {stable_mosaic.version = 11 : i64} {
  func.func @_phase1_kernel(%arg0: i32, %arg1: memref<1x256xf32, #tpu.memory_space<vmem>>, %arg2: memref<1x4x256xf32, #tpu.memory_space<vmem>>, %arg3: memref<1x4x256xf32, #tpu.memory_space<vmem>>, %arg4: memref<1x1x256xf32, #tpu.memory_space<vmem>>, %arg5: memref<1x1x256xf32, #tpu.memory_space<vmem>>, %arg6: memref<1x1x1xf32, #tpu.memory_space<vmem>>, %arg7: memref<1x1x1xf32, #tpu.memory_space<vmem>>) attributes {dimension_semantics = [#tpu.dimension_semantics<parallel>], iteration_bounds = array<i64: 2>, scalar_prefetch = 0 : i64, scratch_operands = 0 : i64, tpu.core_type = #tpu.core_type<tc>, window_params = [{pipeline_mode = #tpu.pipeline_mode<synchronous>, transform_indices = @transform_0, window_bounds = array<i64: 1, 256>}, {transform_indices = @transform_1, window_bounds = array<i64: 1, 4, 256>}, {transform_indices = @transform_2, window_bounds = array<i64: 1, 4, 256>}, {transform_indices = @transform_3, window_bounds = array<i64: 1, 1, 256>}, {transform_indices = @transform_4, window_bounds = array<i64: 1, 1, 256>}, {transform_indices = @transform_5, window_bounds = array<i64: 1, 1, 1>}, {transform_indices = @transform_6, window_bounds = array<i64: 1, 1, 1>}]} {
    %c0 = arith.constant 0 : index
    %c0_0 = arith.constant 0 : index
    %0 = vector.load %arg1[%c0, %c0_0] : memref<1x256xf32, #tpu.memory_space<vmem>>, vector<1x256xf32>
    %c0_1 = arith.constant 0 : index
    %c0_2 = arith.constant 0 : index
    %c0_3 = arith.constant 0 : index
    %1 = vector.load %arg2[%c0_1, %c0_2, %c0_3] : memref<1x4x256xf32, #tpu.memory_space<vmem>>, vector<1x4x256xf32>
    %cst = arith.constant dense<0.000000e+00> : vector<1x256xf32>
    %2 = vector.multi_reduction <add>, %1, %cst [1] : vector<1x4x256xf32> to vector<1x256xf32>
    %cst_4 = arith.constant 2.500000e-01 : f32
    %3 = vector.broadcast %cst_4 : f32 to vector<1x256xf32>
    %4 = arith.mulf %2, %3 : vector<1x256xf32>
    %cst_5 = arith.constant 0.000000e+00 : f32
    %5 = vector.broadcast %cst_5 : f32 to vector<1x256xf32>
    %6 = arith.subf %5, %4 : vector<1x256xf32>
    %cst_6 = arith.constant 0.000000e+00 : f32
    %7 = vector.broadcast %cst_6 : f32 to vector<1x256xf32>
    %8 = arith.subf %7, %4 : vector<1x256xf32>
    %c255_i32 = arith.constant 255 : i32
    %9 = tpu.dynamic_rotate %4 by %c255_i32 dim 1 : vector<1x256xf32>, i32 -> vector<1x256xf32>
    %cst_7 = arith.constant -2.000000e+00 : f32
    %10 = vector.broadcast %cst_7 : f32 to vector<1x256xf32>
    %11 = arith.mulf %10, %9 : vector<1x256xf32>
    %12 = arith.addf %8, %11 : vector<1x256xf32>
    %c254_i32 = arith.constant 254 : i32
    %13 = tpu.dynamic_rotate %4 by %c254_i32 dim 1 : vector<1x256xf32>, i32 -> vector<1x256xf32>
    %14 = arith.addf %6, %13 : vector<1x256xf32>
    %15 = arith.subf %12, %13 : vector<1x256xf32>
    %c240_i32 = arith.constant 240 : i32
    %16 = tpu.dynamic_rotate %4 by %c240_i32 dim 1 : vector<1x256xf32>, i32 -> vector<1x256xf32>
    %cst_8 = arith.constant -2.000000e+00 : f32
    %17 = vector.broadcast %cst_8 : f32 to vector<1x256xf32>
    %18 = arith.mulf %17, %16 : vector<1x256xf32>
    %19 = arith.addf %14, %18 : vector<1x256xf32>
    %c238_i32 = arith.constant 238 : i32
    %20 = tpu.dynamic_rotate %4 by %c238_i32 dim 1 : vector<1x256xf32>, i32 -> vector<1x256xf32>
    %cst_9 = arith.constant 2.000000e+00 : f32
    %21 = vector.broadcast %cst_9 : f32 to vector<1x256xf32>
    %22 = arith.mulf %21, %20 : vector<1x256xf32>
    %23 = arith.addf %19, %22 : vector<1x256xf32>
    %c224_i32 = arith.constant 224 : i32
    %24 = tpu.dynamic_rotate %4 by %c224_i32 dim 1 : vector<1x256xf32>, i32 -> vector<1x256xf32>
    %25 = arith.subf %23, %24 : vector<1x256xf32>
    %26 = arith.addf %15, %24 : vector<1x256xf32>
    %c223_i32 = arith.constant 223 : i32
    %27 = tpu.dynamic_rotate %4 by %c223_i32 dim 1 : vector<1x256xf32>, i32 -> vector<1x256xf32>
    %cst_10 = arith.constant 2.000000e+00 : f32
    %28 = vector.broadcast %cst_10 : f32 to vector<1x256xf32>
    %29 = arith.mulf %28, %27 : vector<1x256xf32>
    %30 = arith.addf %26, %29 : vector<1x256xf32>
    %c222_i32 = arith.constant 222 : i32
    %31 = tpu.dynamic_rotate %4 by %c222_i32 dim 1 : vector<1x256xf32>, i32 -> vector<1x256xf32>
    %32 = arith.addf %25, %31 : vector<1x256xf32>
    %33 = arith.addf %30, %31 : vector<1x256xf32>
    %34 = arith.mulf %32, %32 : vector<1x256xf32>
    %35 = arith.mulf %33, %33 : vector<1x256xf32>
    %36 = arith.addf %34, %35 : vector<1x256xf32>
    %37 = arith.mulf %36, %0 : vector<1x256xf32>
    %cst_11 = arith.constant dense<0.000000e+00> : vector<1xf32>
    %38 = vector.multi_reduction <add>, %37, %cst_11 [1] : vector<1x256xf32> to vector<1xf32>
    %39 = vector.shape_cast %38 : vector<1xf32> to vector<1x1xf32>
    %c0_12 = arith.constant 0 : index
    %c0_13 = arith.constant 0 : index
    %c0_14 = arith.constant 0 : index
    %40 = vector.load %arg6[%c0_12, %c0_13, %c0_14] : memref<1x1x1xf32, #tpu.memory_space<vmem>>, vector<1x1x1xf32>
    %41 = vector.shape_cast %40 : vector<1x1x1xf32> to vector<1x1xf32>
    %42 = vector.shape_cast %39 : vector<1x1xf32> to vector<1x1x1xf32>
    tpu.vector_store %arg6[%c0_12, %c0_13, %c0_14], %42 {strides = array<i32>} : memref<1x1x1xf32, #tpu.memory_space<vmem>>, vector<1x1x1xf32>,
    %cst_15 = arith.constant 1.000000e-10 : f32
    %43 = vector.broadcast %cst_15 : f32 to vector<1x256xf32>
    %44 = arith.addf %37, %43 : vector<1x256xf32>
    %45 = math.sqrt %44 : vector<1x256xf32>
    %46 = arith.mulf %45, %0 : vector<1x256xf32>
    %c0_16 = arith.constant 0 : index
    %c0_17 = arith.constant 0 : index
    %c0_18 = arith.constant 0 : index
    %47 = vector.load %arg4[%c0_16, %c0_17, %c0_18] : memref<1x1x256xf32, #tpu.memory_space<vmem>>, vector<1x1x256xf32>
    %48 = vector.shape_cast %47 : vector<1x1x256xf32> to vector<1x256xf32>
    %49 = vector.shape_cast %46 : vector<1x256xf32> to vector<1x1x256xf32>
    tpu.vector_store %arg4[%c0_16, %c0_17, %c0_18], %49 {strides = array<i32>} : memref<1x1x256xf32, #tpu.memory_space<vmem>>, vector<1x1x256xf32>,
    %c0_19 = arith.constant 0 : index
    %c0_20 = arith.constant 0 : index
    %c0_21 = arith.constant 0 : index
    %50 = vector.load %arg3[%c0_19, %c0_20, %c0_21] : memref<1x4x256xf32, #tpu.memory_space<vmem>>, vector<1x4x256xf32>
    %cst_22 = arith.constant dense<0.000000e+00> : vector<1x256xf32>
    %51 = vector.multi_reduction <add>, %50, %cst_22 [1] : vector<1x4x256xf32> to vector<1x256xf32>
    %cst_23 = arith.constant 2.500000e-01 : f32
    %52 = vector.broadcast %cst_23 : f32 to vector<1x256xf32>
    %53 = arith.mulf %51, %52 : vector<1x256xf32>
    %cst_24 = arith.constant 0.000000e+00 : f32
    %54 = vector.broadcast %cst_24 : f32 to vector<1x256xf32>
    %55 = arith.subf %54, %53 : vector<1x256xf32>
    %cst_25 = arith.constant 0.000000e+00 : f32
    %56 = vector.broadcast %cst_25 : f32 to vector<1x256xf32>
    %57 = arith.subf %56, %53 : vector<1x256xf32>
    %c255_i32_26 = arith.constant 255 : i32
    %58 = tpu.dynamic_rotate %53 by %c255_i32_26 dim 1 : vector<1x256xf32>, i32 -> vector<1x256xf32>
    %cst_27 = arith.constant -2.000000e+00 : f32
    %59 = vector.broadcast %cst_27 : f32 to vector<1x256xf32>
    %60 = arith.mulf %59, %58 : vector<1x256xf32>
    %61 = arith.addf %57, %60 : vector<1x256xf32>
    %c254_i32_28 = arith.constant 254 : i32
    %62 = tpu.dynamic_rotate %53 by %c254_i32_28 dim 1 : vector<1x256xf32>, i32 -> vector<1x256xf32>
    %63 = arith.addf %55, %62 : vector<1x256xf32>
    %64 = arith.subf %61, %62 : vector<1x256xf32>
    %c240_i32_29 = arith.constant 240 : i32
    %65 = tpu.dynamic_rotate %53 by %c240_i32_29 dim 1 : vector<1x256xf32>, i32 -> vector<1x256xf32>
    %cst_30 = arith.constant -2.000000e+00 : f32
    %66 = vector.broadcast %cst_30 : f32 to vector<1x256xf32>
    %67 = arith.mulf %66, %65 : vector<1x256xf32>
    %68 = arith.addf %63, %67 : vector<1x256xf32>
    %c238_i32_31 = arith.constant 238 : i32
    %69 = tpu.dynamic_rotate %53 by %c238_i32_31 dim 1 : vector<1x256xf32>, i32 -> vector<1x256xf32>
    %cst_32 = arith.constant 2.000000e+00 : f32
    %70 = vector.broadcast %cst_32 : f32 to vector<1x256xf32>
    %71 = arith.mulf %70, %69 : vector<1x256xf32>
    %72 = arith.addf %68, %71 : vector<1x256xf32>
    %c224_i32_33 = arith.constant 224 : i32
    %73 = tpu.dynamic_rotate %53 by %c224_i32_33 dim 1 : vector<1x256xf32>, i32 -> vector<1x256xf32>
    %74 = arith.subf %72, %73 : vector<1x256xf32>
    %75 = arith.addf %64, %73 : vector<1x256xf32>
    %c223_i32_34 = arith.constant 223 : i32
    %76 = tpu.dynamic_rotate %53 by %c223_i32_34 dim 1 : vector<1x256xf32>, i32 -> vector<1x256xf32>
    %cst_35 = arith.constant 2.000000e+00 : f32
    %77 = vector.broadcast %cst_35 : f32 to vector<1x256xf32>
    %78 = arith.mulf %77, %76 : vector<1x256xf32>
    %79 = arith.addf %75, %78 : vector<1x256xf32>
    %c222_i32_36 = arith.constant 222 : i32
    %80 = tpu.dynamic_rotate %53 by %c222_i32_36 dim 1 : vector<1x256xf32>, i32 -> vector<1x256xf32>
    %81 = arith.addf %74, %80 : vector<1x256xf32>
    %82 = arith.addf %79, %80 : vector<1x256xf32>
    %83 = arith.mulf %81, %81 : vector<1x256xf32>
    %84 = arith.mulf %82, %82 : vector<1x256xf32>
    %85 = arith.addf %83, %84 : vector<1x256xf32>
    %86 = arith.mulf %85, %0 : vector<1x256xf32>
    %cst_37 = arith.constant dense<0.000000e+00> : vector<1xf32>
    %87 = vector.multi_reduction <add>, %86, %cst_37 [1] : vector<1x256xf32> to vector<1xf32>
    %88 = vector.shape_cast %87 : vector<1xf32> to vector<1x1xf32>
    %c0_38 = arith.constant 0 : index
    %c0_39 = arith.constant 0 : index
    %c0_40 = arith.constant 0 : index
    %89 = vector.load %arg7[%c0_38, %c0_39, %c0_40] : memref<1x1x1xf32, #tpu.memory_space<vmem>>, vector<1x1x1xf32>
    %90 = vector.shape_cast %89 : vector<1x1x1xf32> to vector<1x1xf32>
    %91 = vector.shape_cast %88 : vector<1x1xf32> to vector<1x1x1xf32>
    tpu.vector_store %arg7[%c0_38, %c0_39, %c0_40], %91 {strides = array<i32>} : memref<1x1x1xf32, #tpu.memory_space<vmem>>, vector<1x1x1xf32>,
    %cst_41 = arith.constant 1.000000e-10 : f32
    %92 = vector.broadcast %cst_41 : f32 to vector<1x256xf32>
    %93 = arith.addf %86, %92 : vector<1x256xf32>
    %94 = math.sqrt %93 : vector<1x256xf32>
    %95 = arith.mulf %94, %0 : vector<1x256xf32>
    %c0_42 = arith.constant 0 : index
    %c0_43 = arith.constant 0 : index
    %c0_44 = arith.constant 0 : index
    %96 = vector.load %arg5[%c0_42, %c0_43, %c0_44] : memref<1x1x256xf32, #tpu.memory_space<vmem>>, vector<1x1x256xf32>
    %97 = vector.shape_cast %96 : vector<1x1x256xf32> to vector<1x256xf32>
    %98 = vector.shape_cast %95 : vector<1x256xf32> to vector<1x1x256xf32>
    tpu.vector_store %arg5[%c0_42, %c0_43, %c0_44], %98 {strides = array<i32>} : memref<1x1x256xf32, #tpu.memory_space<vmem>>, vector<1x1x256xf32>,
    return
  }
  func.func @transform_0(%arg0: i32) -> (i32, i32) {
    %c0_i32 = arith.constant 0 : i32
    %c0_i32_0 = arith.constant 0 : i32
    %c0_i32_1 = arith.constant 0 : i32
    return %c0_i32, %c0_i32_0 : i32, i32
  }
  func.func @transform_1(%arg0: i32) -> (i32, i32, i32) {
    %c0_i32 = arith.constant 0 : i32
    %c0_i32_0 = arith.constant 0 : i32
    %c0_i32_1 = arith.constant 0 : i32
    return %arg0, %c0_i32, %c0_i32_0 : i32, i32, i32
  }
  func.func @transform_2(%arg0: i32) -> (i32, i32, i32) {
    %c0_i32 = arith.constant 0 : i32
    %c0_i32_0 = arith.constant 0 : i32
    %c0_i32_1 = arith.constant 0 : i32
    return %arg0, %c0_i32, %c0_i32_0 : i32, i32, i32
  }
  func.func @transform_3(%arg0: i32) -> (i32, i32, i32) {
    %c0_i32 = arith.constant 0 : i32
    %c0_i32_0 = arith.constant 0 : i32
    %c0_i32_1 = arith.constant 0 : i32
    return %arg0, %c0_i32, %c0_i32_0 : i32, i32, i32
  }
  func.func @transform_4(%arg0: i32) -> (i32, i32, i32) {
    %c0_i32 = arith.constant 0 : i32
    %c0_i32_0 = arith.constant 0 : i32
    %c0_i32_1 = arith.constant 0 : i32
    return %arg0, %c0_i32, %c0_i32_0 : i32, i32, i32
  }
  func.func @transform_5(%arg0: i32) -> (i32, i32, i32) {
    %c0_i32 = arith.constant 0 : i32
    %c0_i32_0 = arith.constant 0 : i32
    %c0_i32_1 = arith.constant 0 : i32
    return %arg0, %c0_i32, %c0_i32_0 : i32, i32, i32
  }
  func.func @transform_6(%arg0: i32) -> (i32, i32, i32) {
    %c0_i32 = arith.constant 0 : i32
    %c0_i32_0 = arith.constant 0 : i32
    %c0_i32_1 = arith.constant 0 : i32
    return %arg0, %c0_i32, %c0_i32_0 : i32, i32, i32
  }
}

module attributes {stable_mosaic.version = 11 : i64} {
  func.func @_phase2_kernel(%arg0: i32, %arg1: memref<2xf32, #tpu.memory_space<smem>>, %arg2: memref<1x1x256xf32, #tpu.memory_space<vmem>>, %arg3: memref<1x1x256xf32, #tpu.memory_space<vmem>>, %arg4: memref<1x1x1xf32, #tpu.memory_space<vmem>>) attributes {dimension_semantics = [#tpu.dimension_semantics<parallel>], iteration_bounds = array<i64: 2>, scalar_prefetch = 0 : i64, scratch_operands = 0 : i64, tpu.core_type = #tpu.core_type<tc>, window_params = [{transform_indices = @transform_0, window_bounds = array<i64: 2>}, {transform_indices = @transform_1, window_bounds = array<i64: 1, 1, 256>}, {transform_indices = @transform_2, window_bounds = array<i64: 1, 1, 256>}, {transform_indices = @transform_3, window_bounds = array<i64: 1, 1, 1>}]} {
    %c0 = arith.constant 0 : index
    %0 = memref.load %arg1[%c0] : memref<2xf32, #tpu.memory_space<smem>>
    %c1 = arith.constant 1 : index
    %1 = memref.load %arg1[%c1] : memref<2xf32, #tpu.memory_space<smem>>
    %c0_0 = arith.constant 0 : index
    %c0_1 = arith.constant 0 : index
    %c0_2 = arith.constant 0 : index
    %2 = vector.load %arg2[%c0_0, %c0_1, %c0_2] : memref<1x1x256xf32, #tpu.memory_space<vmem>>, vector<1x1x256xf32>
    %3 = vector.shape_cast %2 : vector<1x1x256xf32> to vector<1x256xf32>
    %4 = vector.broadcast %1 : f32 to vector<1x256xf32>
    %5 = arith.mulf %3, %4 : vector<1x256xf32>
    %6 = math.tanh %5 : vector<1x256xf32>
    %c0_3 = arith.constant 0 : index
    %c0_4 = arith.constant 0 : index
    %c0_5 = arith.constant 0 : index
    %7 = vector.load %arg3[%c0_3, %c0_4, %c0_5] : memref<1x1x256xf32, #tpu.memory_space<vmem>>, vector<1x1x256xf32>
    %8 = vector.shape_cast %7 : vector<1x1x256xf32> to vector<1x256xf32>
    %9 = vector.broadcast %0 : f32 to vector<1x256xf32>
    %10 = arith.mulf %8, %9 : vector<1x256xf32>
    %11 = math.tanh %10 : vector<1x256xf32>
    %12 = arith.mulf %6, %11 : vector<1x256xf32>
    %13 = arith.mulf %12, %12 : vector<1x256xf32>
    %cst = arith.constant dense<0.000000e+00> : vector<1xf32>
    %14 = vector.multi_reduction <add>, %13, %cst [1] : vector<1x256xf32> to vector<1xf32>
    %15 = vector.shape_cast %14 : vector<1xf32> to vector<1x1xf32>
    %c0_6 = arith.constant 0 : index
    %c0_7 = arith.constant 0 : index
    %c0_8 = arith.constant 0 : index
    %16 = vector.load %arg4[%c0_6, %c0_7, %c0_8] : memref<1x1x1xf32, #tpu.memory_space<vmem>>, vector<1x1x1xf32>
    %17 = vector.shape_cast %16 : vector<1x1x1xf32> to vector<1x1xf32>
    %18 = vector.shape_cast %15 : vector<1x1xf32> to vector<1x1x1xf32>
    tpu.vector_store %arg4[%c0_6, %c0_7, %c0_8], %18 {strides = array<i32>} : memref<1x1x1xf32, #tpu.memory_space<vmem>>, vector<1x1x1xf32>,
    return
  }
  func.func @transform_0(%arg0: i32) -> i32 {
    %c0_i32 = arith.constant 0 : i32
    %c0_i32_0 = arith.constant 0 : i32
    return %c0_i32 : i32
  }
  func.func @transform_1(%arg0: i32) -> (i32, i32, i32) {
    %c0_i32 = arith.constant 0 : i32
    %c0_i32_0 = arith.constant 0 : i32
    %c0_i32_1 = arith.constant 0 : i32
    return %arg0, %c0_i32, %c0_i32_0 : i32, i32, i32
  }
  func.func @transform_2(%arg0: i32) -> (i32, i32, i32) {
    %c0_i32 = arith.constant 0 : i32
    %c0_i32_0 = arith.constant 0 : i32
    %c0_i32_1 = arith.constant 0 : i32
    return %arg0, %c0_i32, %c0_i32_0 : i32, i32, i32
  }
  func.func @transform_3(%arg0: i32) -> (i32, i32, i32) {
    %c0_i32 = arith.constant 0 : i32
    %c0_i32_0 = arith.constant 0 : i32
    %c0_i32_1 = arith.constant 0 : i32
    return %arg0, %c0_i32, %c0_i32_0 : i32, i32, i32
  }
}

</mosaic_0001>

<bundles_post_ra>
// kernel: _lambda_.2
= control target key start
LH: loop header
LB: loop body
LE: loop exit
PB: predicated region body
PF: predicated region fallthrough
CT: control target
= control target key end

     0   :  { %s849_s21 = smov 0   ;;  %s1030_s0 = inlined_call_operand.vmem [shape: f32[1,256], index: 0, kind: input, shape index: {}]   ;;  %s1031_s1 = inlined_call_operand.vmem [shape: f32[2,4,256], index: 1, kind: input, shape index: {}]   ;;  %s1032_s2 = inlined_call_operand.vmem [shape: f32[2,4,256], index: 2, kind: input, shape index: {}]   ;;  %s1033_s3 = inlined_call_operand.vmem [shape: f32[2,1,256], index: 3, kind: output, shape index: {0}]   ;;  %s1034_s4 = inlined_call_operand.vmem [shape: f32[2,1,256], index: 4, kind: output, shape index: {1}]   ;;  %s1035_s5 = inlined_call_operand.vmem [shape: f32[2,1,1], index: 5, kind: output, shape index: {2}]   ;;  %s1036_s6 = inlined_call_operand.vmem [shape: f32[2,1,1], index: 6, kind: output, shape index: {3}]  }
   0x1 LB: > { %s757_s22 = sadd.s32 4294967295, %s804_s21   ;;  %p761_p0 = scmp.ge.s32.totalorder %s804_s21, 1  ;;  %s804_s21 = sphi %s849_s21, %s17_s21  }
   0x2   : > { %p229_p1 = scmp.lt.s32.totalorder %s804_s21, 3 }
   0x4   : > { %p230_p2 = pnand %p761_p0, %p229_p1 }
   0x5   : > { %p273_p3 = scmp.lt.s32.totalorder (!%p230_p2), %s757_s22, 1  ;;  %s806_s30 = smov (!%p230_p2), 127  }
   0x6   : > { %233 = sbr.rel (%p230_p2) target bundleno = 350 (0x15e), region = 32  ;;  %s807_s7 = smov (!%p230_p2), 126  }
   0x7   : > { %s808_s8 = smov (!%p230_p2), 112   ;;  %s809_s9 = smov (!%p230_p2), 110  }
   0x8   : > { %s810_s10 = smov (!%p230_p2), 96   ;;  %s811_s11 = smov (!%p230_p2), 95  }
   0x9   : > { %s812_s12 = smov (!%p230_p2), 94  }
   0xb   : > { %s1038_s22 = smov (!%p273_p3, %s757_s22), 1  ;;  %vm302_vm0 = vcmask 1043456   ;;  %v325_v46 = vlaneseq  ;;  %vm419_vm8 = vcmask 1040384  }
   0xc   : > { %s770_s23 = sshll.u32 %s1038_s22, 3  ;;  %s766_s15 = sshll.u32 %s1038_s22, 1 }
   0xd   : > { %s282_s26 = scalar_lea.vmem %s1032_s2, %s770_s23  ;;  %s277_s29 = scalar_lea.vmem %s1031_s1, %s770_s23  ;;  %v903_v49 = vand.u32 127, %v325_v46  ;;  %v908_v54 = vshrl.u32 %v325_v46, 7 }
   0xe   : > { %v468_v0 = vld [vmem:[%s282_s26] sm:$0xff]  ;;  %s286_s18 = scalar_lea.vmem %s1033_s3, %s766_s15  ;;  %s290_s23 = scalar_lea.vmem %s1034_s4, %s766_s15 }
   0xf   : > { %v298_v1 = vld [vmem:[%s277_s29] sm:$0xff]  ;;  %v472_v2 = vsel %vm302_vm0, %v468_v0, 0.0  ;;  %v470_v4 = vcombine.high %v468_v0, %v468_v0  ;;  %vm327_vm1 = vcmp.lt.s32.totalorder %v903_v49, 127  ;;  %vm349_vm2 = vcmp.lt.s32.totalorder %v903_v49, 112  ;;  %s293_s26 = scalar_lea.vmem %s1035_s5, %s1038_s22  ;;  %s296_s29 = scalar_lea.vmem %s1036_s6, %s1038_s22 }
  0x10   : > { %v303_v3 = vsel %vm302_vm0, %v298_v1, 0.0  ;;  %v300_v5 = vcombine.high %v298_v1, %v298_v1  ;;  %v473_v6 = vrot.slane %v472_v2, 4  ;;  %vm338_vm3 = vcmp.lt.s32.totalorder %v903_v49, 126 }
  0x11   : > { %v304_v7 = vrot.slane %v303_v3, 4  ;;  %v479_v8 = vsel %vm302_vm0, %v470_v4, 0.0  ;;  %v413_v4 = vsub.s32 1, %v908_v54  ;;  %vm360_vm4 = vcmp.lt.s32.totalorder %v903_v49, 110 }
  0x12   : > { %v310_v9 = vsel %vm302_vm0, %v300_v5, 0.0  ;;  %v474_v10 = vadd.f32 %v473_v6, %v472_v2  ;;  %v480_v12 = vrot.slane %v479_v8, 4  ;;  %vm371_vm5 = vcmp.lt.s32.totalorder %v903_v49, 96 }
  0x13   : > { %v305_v11 = vadd.f32 %v304_v7, %v303_v3  ;;  %v311_v13 = vrot.slane %v310_v9, 4  ;;  %v409_v3 = vsub.s32 0, %v908_v54  ;;  %vm382_vm6 = vcmp.lt.s32.totalorder %v903_v49, 95 }
  0x14   : > { %v475_v14 = vrot.slane %v474_v10, 2  ;;  %v481_v16 = vadd.f32 %v480_v12, %v479_v8  ;;  %vm393_vm7 = vcmp.lt.s32.totalorder %v903_v49, 94 }
  0x15   : > { %v306_v15 = vrot.slane %v305_v11, 2  ;;  %v312_v17 = vadd.f32 %v311_v13, %v310_v9 }
  0x16   : > { %v476_v18 = vadd.f32 %v475_v14, %v474_v10  ;;  %v482_v20 = vrot.slane %v481_v16, 2 }
  0x17   : > { %v307_v19 = vadd.f32 %v306_v15, %v305_v11  ;;  %v313_v21 = vrot.slane %v312_v17, 2  ;;  %v297_v11 = vld [vmem:[%s1030_s0] sm:$0x3] }
  0x18   : > { %v477_v22 = vrot.slane %v476_v18, 1  ;;  %v483_v24 = vadd.f32 %v482_v20, %v481_v16 }
  0x19   : > { %v308_v23 = vrot.slane %v307_v19, 1  ;;  %v314_v25 = vadd.f32 %v313_v21, %v312_v17 }
  0x1a   : > { %v478_v26 = vadd.f32 %v477_v22, %v476_v18  ;;  %v484_v28 = vrot.slane %v483_v24, 1  ;;  %v953_v22 = vrot.slane %v297_v11, %v409_v3 }
  0x1b   : > { %v309_v27 = vadd.f32 %v308_v23, %v307_v19  ;;  %v315_v29 = vrot.slane %v314_v25, 1  ;;  %v955_v23 = vrot.slane %v297_v11, %v413_v4 }
  0x1c   : > { %v866_v30 = vmul.f32 0.25, %v478_v26  ;;  %v485_v32 = vadd.f32 %v484_v28, %v483_v24 }
  0x1d   : > { %v868_v31 = vmul.f32 0.25, %v309_v27  ;;  %v316_v34 = vadd.f32 %v315_v29, %v314_v25 }
  0x1e   : > { %490 = vrot.lane.b32.xlu1 %v866_v30, %s806_s30  ;;  %v872_v33 = vmul.f32 0.25, %v485_v32  ;;  %v488_v55 = vsub.f32 0.0, %v866_v30 }
  0x1f   : > { %321 = vrot.lane.b32.xlu0 %v868_v31, %s806_s30  ;;  %v876_v35 = vmul.f32 0.25, %v316_v34  ;;  %v319_v58 = vsub.f32 0.0, %v868_v31 }
  0x20   : > { %v489_v59 = vsub.f32 0.0, %v872_v33 }
  0x21   : > { %v320_v60 = vsub.f32 0.0, %v876_v35 }
  0x22   : > { %492 = vrot.lane.b32.xlu1 %v872_v33, %s806_s30 }
  0x23   : > { %334 = vrot.lane.b32.xlu0 %v868_v31, %s807_s7 }
  0x26   : > { %336 = vrot.lane.b32.xlu1 %v876_v35, %s807_s7 }
  0x27   : > { %345 = vrot.lane.b32.xlu0 %v868_v31, %s808_s8 }
  0x2a   : > { %347 = vrot.lane.b32.xlu1 %v876_v35, %s808_s8 }
  0x2b   : > { %500 = vrot.lane.b32.xlu0 %v866_v30, %s807_s7 }
  0x2e   : > { %502 = vrot.lane.b32.xlu1 %v872_v33, %s807_s7 }
  0x2f   : > { %510 = vrot.lane.b32.xlu0 %v866_v30, %s808_s8 }
  0x32   : > { %512 = vrot.lane.b32.xlu1 %v872_v33, %s808_s8 }
  0x33   : > { %356 = vrot.lane.b32.xlu0 %v868_v31, %s809_s9 }
  0x36   : > { %358 = vrot.lane.b32.xlu1 %v876_v35, %s809_s9 }
  0x37   : > { %323 = vrot.lane.b32.xlu0 %v876_v35, %s806_s30 }
  0x3a   : > { %522 = vrot.lane.b32.xlu1 %v872_v33, %s809_s9 }
  0x3b   : > { %520 = vrot.lane.b32.xlu0 %v866_v30, %s809_s9 }
  0x3e   : > { %369 = vrot.lane.b32.xlu1 %v876_v35, %s810_s10 }
  0x3f   : > { %367 = vrot.lane.b32.xlu0 %v868_v31, %s810_s10 }
  0x42   : > { %380 = vrot.lane.b32.xlu1 %v876_v35, %s811_s11 }
  0x43   : > { %378 = vrot.lane.b32.xlu0 %v868_v31, %s811_s11 }
  0x46   : > { %532 = vrot.lane.b32.xlu1 %v872_v33, %s810_s10 }
  0x47   : > { %530 = vrot.lane.b32.xlu0 %v866_v30, %s810_s10 }
  0x4a   : > { %542 = vrot.lane.b32.xlu1 %v872_v33, %s811_s11 }
  0x4b   : > { %540 = vrot.lane.b32.xlu0 %v866_v30, %s811_s11 }
  0x4e   : > { %391 = vrot.lane.b32.xlu1 %v876_v35, %s812_s12 }
  0x4f   : > { %389 = vrot.lane.b32.xlu0 %v868_v31, %s812_s12 }
  0x52   : > { %552 = vrot.lane.b32.xlu1 %v872_v33, %s812_s12 }
  0x53   : > { %550 = vrot.lane.b32.xlu0 %v866_v30, %s812_s12 }
  0x90   : > { %v491_v36 = vpop.permute.xlu1 %490 }
  0x91   : > { %v322_v37 = vpop.permute.xlu0 %321 }
  0x94   : > { %v493_v38 = vpop.permute.xlu1 %492 }
  0x95   : > { %v335_v39 = vpop.permute.xlu0 %334  ;;  %v494_v56 = vsel %vm327_vm1, %v491_v36, %v493_v38  ;;  %v495_v57 = vsel %vm327_vm1, %v493_v38, %v491_v36 }
  0x96   : > { %v496_v5 = vmul.f32 -2.0, %v494_v56  ;;  %v497_v6 = vmul.f32 -2.0, %v495_v57 }
  0x98   : > { %v337_v41 = vpop.permute.xlu1 %336  ;;  %v949_v20 = vadd.f32 %v496_v5, %v488_v55  ;;  %v951_v21 = vadd.f32 %v497_v6, %v489_v59 }
  0x99   : > { %v346_v40 = vpop.permute.xlu0 %345  ;;  %v925_v63 = vsel %vm338_vm3, %v335_v39, %v337_v41  ;;  %v929_v0 = vsel %vm338_vm3, %v337_v41, %v335_v39 }
  0x9a   : > { %v341_v12 = vadd.f32 %v925_v63, %v319_v58  ;;  %v342_v13 = vadd.f32 %v929_v0, %v320_v60 }
  0x9c   : > { %v348_v43 = vpop.permute.xlu1 %347 }
  0x9d   : > { %v501_v42 = vpop.permute.xlu0 %500  ;;  %v350_v61 = vsel %vm349_vm2, %v346_v40, %v348_v43  ;;  %v351_v62 = vsel %vm349_vm2, %v348_v43, %v346_v40 }
  0x9e   : > { %v352_v9 = vmul.f32 -2.0, %v350_v61  ;;  %v353_v10 = vmul.f32 -2.0, %v351_v62 }
  0xa0   : > { %v503_v45 = vpop.permute.xlu1 %502  ;;  %v354_v24 = vadd.f32 %v352_v9, %v341_v12  ;;  %v355_v25 = vadd.f32 %v353_v10, %v342_v13 }
  0xa1   : > { %v511_v44 = vpop.permute.xlu0 %510  ;;  %v504_v28 = vsel %vm338_vm3, %v501_v42, %v503_v45  ;;  %v505_v29 = vsel %vm338_vm3, %v503_v45, %v501_v42 }
  0xa2   : > { %v506_v42 = vadd.f32 %v504_v28, %v488_v55  ;;  %v507_v43 = vadd.f32 %v505_v29, %v489_v59  ;;  %v509_v45 = vsub.f32 %v951_v21, %v505_v29 }
  0xa4   : > { %v513_v48 = vpop.permute.xlu1 %512 }
  0xa5   : > { %v357_v47 = vpop.permute.xlu0 %356  ;;  %v514_v14 = vsel %vm349_vm2, %v511_v44, %v513_v48  ;;  %v515_v15 = vsel %vm349_vm2, %v513_v48, %v511_v44  ;;  %v508_v44 = vsub.f32 %v949_v20, %v504_v28  ;;  %vm425_vm2 = vcmask 0  }
  0xa6   : > { %v516_v30 = vmul.f32 -2.0, %v514_v14  ;;  %v517_v31 = vmul.f32 -2.0, %v515_v15 }
  0xa8   : > { %v359_v50 = vpop.permute.xlu1 %358  ;;  %v518_v59 = vadd.f32 %v516_v30, %v506_v42 }
  0xa9   : > { %v324_v51 = vpop.permute.xlu0 %323  ;;  %v361_v26 = vsel %vm360_vm4, %v357_v47, %v359_v50  ;;  %v362_v27 = vsel %vm360_vm4, %v359_v50, %v357_v47 }
  0xaa   : > { %v328_v7 = vsel %vm327_vm1, %v322_v37, %v324_v51  ;;  %v329_v8 = vsel %vm327_vm1, %v324_v51, %v322_v37  ;;  %v363_v38 = vmul.f32 2.0, %v361_v26  ;;  %v364_v39 = vmul.f32 2.0, %v362_v27 }
  0xab   : > { %v330_v16 = vmul.f32 -2.0, %v328_v7  ;;  %v331_v17 = vmul.f32 -2.0, %v329_v8  ;;  %vm465_vm1 = vcmp.lt.s32.totalorder %v325_v46, 256 }
  0xac   : > { %v523_v52 = vpop.permute.xlu1 %522  ;;  %v365_v61 = vadd.f32 %v363_v38, %v354_v24  ;;  %v366_v62 = vadd.f32 %v364_v39, %v355_v25 }
  0xad   : > { %v521_v53 = vpop.permute.xlu0 %520  ;;  %v332_v32 = vadd.f32 %v330_v16, %v319_v58  ;;  %v333_v33 = vadd.f32 %v331_v17, %v320_v60  ;;  %v519_v60 = vadd.f32 %v517_v31, %v507_v43 }
  0xae   : > { %v524_v34 = vsel %vm360_vm4, %v521_v53, %v523_v52  ;;  %v525_v35 = vsel %vm360_vm4, %v523_v52, %v521_v53 }
  0xaf   : > { %v526_v47 = vmul.f32 2.0, %v524_v34  ;;  %v527_v48 = vmul.f32 2.0, %v525_v35  ;;  %v343_v52 = vsub.f32 %v332_v32, %v925_v63  ;;  %v344_v53 = vsub.f32 %v333_v33, %v929_v0 }
  0xb0   : > { %v370_v1 = vpop.permute.xlu1 %369 }
  0xb1   : > { %v368_v2 = vpop.permute.xlu0 %367  ;;  %v529_v63 = vadd.f32 %v527_v48, %v519_v60 }
  0xb2   : > { %v372_v50 = vsel %vm371_vm5, %v368_v2, %v370_v1  ;;  %v373_v51 = vsel %vm371_vm5, %v370_v1, %v368_v2  ;;  %v528_v2 = vadd.f32 %v526_v47, %v518_v59 }
  0xb3   : > { %v376_v3 = vadd.f32 %v372_v50, %v343_v52  ;;  %v377_v4 = vadd.f32 %v373_v51, %v344_v53  ;;  %v374_v6 = vsub.f32 %v365_v61, %v372_v50  ;;  %v375_v0 = vsub.f32 %v366_v62, %v373_v51 }
  0xb4   : > { %v381_v18 = vpop.permute.xlu1 %380 }
  0xb5   : > { %v379_v19 = vpop.permute.xlu0 %378 }
  0xb6   : > { %v383_v40 = vsel %vm382_vm6, %v379_v19, %v381_v18  ;;  %v384_v41 = vsel %vm382_vm6, %v381_v18, %v379_v19 }
  0xb7   : > { %v385_v56 = vmul.f32 2.0, %v383_v40  ;;  %v386_v57 = vmul.f32 2.0, %v384_v41 }
  0xb8   : > { %v533_v36 = vpop.permute.xlu1 %532 }
  0xb9   : > { %v531_v37 = vpop.permute.xlu0 %530  ;;  %v387_v7 = vadd.f32 %v385_v56, %v376_v3  ;;  %v388_v8 = vadd.f32 %v386_v57, %v377_v4 }
  0xba   : > { %v534_v9 = vsel %vm371_vm5, %v531_v37, %v533_v36  ;;  %v535_v10 = vsel %vm371_vm5, %v533_v36, %v531_v37 }
  0xbb   : > { %v536_v21 = vsub.f32 %v528_v2, %v534_v9  ;;  %v537_v24 = vsub.f32 %v529_v63, %v535_v10  ;;  %v538_v25 = vadd.f32 %v534_v9, %v508_v44  ;;  %v539_v26 = vadd.f32 %v535_v10, %v509_v45 }
  0xbc   : > { %v543_v55 = vpop.permute.xlu1 %542 }
  0xbd   : > { %v541_v58 = vpop.permute.xlu0 %540 }
  0xbe   : > { %v544_v5 = vsel %vm382_vm6, %v541_v58, %v543_v55  ;;  %v545_v1 = vsel %vm382_vm6, %v543_v55, %v541_v58 }
  0xbf   : > { %v546_v13 = vmul.f32 2.0, %v544_v5  ;;  %v547_v14 = vmul.f32 2.0, %v545_v1  ;;  %v813_v5 = vmov 1966171168  }
  0xc0   : > { %v392_v11 = vpop.permute.xlu1 %391  ;;  %v449_v1 = vunpack.c.l.s4 %v813_v5 }
  0xc1   : > { %v390_v12 = vpop.permute.xlu0 %389  ;;  %v548_v33 = vadd.f32 %v546_v13, %v538_v25  ;;  %v549_v34 = vadd.f32 %v547_v14, %v539_v26 }
  0xc2   : > { %v394_v15 = vsel %vm393_vm7, %v390_v12, %v392_v11  ;;  %v395_v16 = vsel %vm393_vm7, %v392_v11, %v390_v12 }
  0xc3   : > { %v396_v17 = vadd.f32 %v394_v15, %v374_v6  ;;  %v397_v18 = vadd.f32 %v395_v16, %v375_v0  ;;  %v398_v19 = vadd.f32 %v394_v15, %v387_v7  ;;  %v399_v20 = vadd.f32 %v395_v16, %v388_v8 }
  0xc4   : > { %v553_v31 = vpop.permute.xlu1 %552  ;;  %v450_v8 = vunpack.c.0.s8 %v449_v1 }
  0xc5   : > { %v400_v27 = vmul.f32 %v396_v17, %v396_v17  ;;  %v401_v28 = vmul.f32 %v397_v18, %v397_v18  ;;  %v402_v29 = vmul.f32 %v398_v19, %v398_v19  ;;  %v403_v30 = vmul.f32 %v399_v20, %v399_v20  ;;  %v551_v32 = vpop.permute.xlu0 %550 }
  0xc6   : > { %v554_v35 = vsel %vm393_vm7, %v551_v32, %v553_v31  ;;  %v555_v36 = vsel %vm393_vm7, %v553_v31, %v551_v32  ;;  %v453_v17 = vsub.s32 %v450_v8, %v908_v54 }
  0xc7   : > { %v404_v37 = vadd.f32 %v402_v29, %v400_v27  ;;  %v405_v38 = vadd.f32 %v403_v30, %v401_v28  ;;  %v556_v39 = vadd.f32 %v554_v35, %v536_v21  ;;  %v557_v40 = vadd.f32 %v555_v36, %v537_v24 }
  0xc8   : > { %v558_v41 = vadd.f32 %v554_v35, %v548_v33  ;;  %v559_v42 = vadd.f32 %v555_v36, %v549_v34 }
  0xc9   : > { %v560_v43 = vmul.f32 %v556_v39, %v556_v39  ;;  %v561_v44 = vmul.f32 %v557_v40, %v557_v40  ;;  %v417_v45 = vmul.f32 %v953_v22, %v404_v37  ;;  %v418_v47 = vmul.f32 %v955_v23, %v405_v38 }
  0xca   : > { %v562_v48 = vmul.f32 %v558_v41, %v558_v41  ;;  %v563_v50 = vmul.f32 %v559_v42, %v559_v42 }
  0xcb   : > { %v420_v51 = vsel %vm419_vm8, %v417_v45, 0.0  ;;  %v421_v49 = vsel %vm419_vm8, %v418_v47, 0.0  ;;  %v427_v52 = vadd.f32 1e-10, %v417_v45  ;;  %v428_v53 = vadd.f32 1e-10, %v418_v47 }
  0xcc   : > { %v564_v56 = vadd.f32 %v562_v48, %v560_v43  ;;  %v565_v57 = vadd.f32 %v563_v50, %v561_v44  ;;  %v422_v55 = vadd.f32 %v421_v49, %v420_v51 }
  0xcd   : > { %790 = vrsqrt.f32 %v427_v52  ;;  %vm431_vm9 = vcmp.eq.f32.partialorder %v427_v52, inf  ;;  %v434_v0 = vand.u32 2147483648, %v427_v52  ;;  %vm433_vm10 = vcmp.eq.f32.partialorder %v427_v52, 0.0 }
  0xce   : > { %792 = vrsqrt.f32 %v428_v53  ;;  %423 = vadd.xlane.f32.xlu0 %v422_v55  ;;  %v566_v58 = vmul.f32 %v564_v56, %v953_v22  ;;  %v567_v59 = vmul.f32 %v565_v57, %v955_v23  ;;  %vm438_vm11 = vcmp.eq.f32.partialorder %v428_v53, inf }
  0xcf   : > { %v441_v10 = vand.u32 2147483648, %v428_v53  ;;  %vm440_vm12 = vcmp.eq.f32.partialorder %v428_v53, 0.0 }
  0xd0   : > { %v568_v60 = vsel %vm419_vm8, %v566_v58, 0.0  ;;  %v569_v61 = vsel %vm419_vm8, %v567_v59, 0.0  ;;  %v574_v62 = vadd.f32 1e-10, %v566_v58  ;;  %v575_v3 = vadd.f32 1e-10, %v567_v59 }
  0xd1   : > { %v570_v4 = vadd.f32 %v569_v61, %v568_v60 }
  0xd2   : > { %794 = vrsqrt.f32 %v574_v62  ;;  %vm578_vm13 = vcmp.eq.f32.partialorder %v574_v62, inf  ;;  %v581_v21 = vand.u32 2147483648, %v574_v62  ;;  %vm580_vm14 = vcmp.eq.f32.partialorder %v574_v62, 0.0 }
  0xd3   : > { %796 = vrsqrt.f32 %v575_v3  ;;  %571 = vadd.xlane.f32.xlu1 %v570_v4  ;;  %vm585_vm15 = vcmp.eq.f32.partialorder %v575_v3, inf  ;;  %v588_v26 = vand.u32 2147483648, %v575_v3  ;;  %vm587_vm0 = vcmp.eq.f32.partialorder %v575_v3, 0.0 }
  0xda   : > { %v791_v2 = vpop.eup %790 }
  0xdb   : > { %v793_v63 = vpop.eup %792  ;;  %v430_v6 = vmul.f32 %v791_v2, %v427_v52 }
  0xdc   : > { %v437_v7 = vmul.f32 %v793_v63, %v428_v53 }
  0xdd   : > { %v432_v9 = vsel %vm431_vm9, %v427_v52, %v430_v6 }
  0xde   : > { %v435_v11 = vsel %vm433_vm10, %v434_v0, %v432_v9  ;;  %v439_v12 = vsel %vm438_vm11, %v428_v53, %v437_v7 }
  0xdf   : > { %v442_v13 = vsel %vm440_vm12, %v441_v10, %v439_v12  ;;  %v443_v14 = vmul.f32 %v435_v11, %v953_v22  ;;  %v795_v15 = vpop.eup %794 }
  0xe0   : > { %v444_v16 = vmul.f32 %v442_v13, %v955_v23  ;;  %v797_v18 = vpop.eup %796  ;;  %v577_v19 = vmul.f32 %v795_v15, %v574_v62 }
  0xe1   : > { %v584_v24 = vmul.f32 %v797_v18, %v575_v3 }
  0xe2   : > { %v447_v20 = vcombine.low %v443_v14, %v444_v16  ;;  %v579_v25 = vsel %vm578_vm13, %v574_v62, %v577_v19 }
  0xe3   : > { %v582_v28 = vsel %vm580_vm14, %v581_v21, %v579_v25  ;;  %v586_v29 = vsel %vm585_vm15, %v575_v3, %v584_v24 }
  0xe4   : > { %v454_v27 = vrot.slane %v447_v20, %v453_v17  ;;  %v589_v54 = vsel %vm587_vm0, %v588_v26, %v586_v29  ;;  %v590_v30 = vmul.f32 %v582_v28, %v953_v22 }
  0xe5   : > { %v591_v32 = vmul.f32 %v589_v54, %v955_v23 }
  0xe6   : > { %v461_v31 = vrot.slane %v454_v27, %v453_v17 }
  0xe7   : > { %v594_v33 = vcombine.low %v590_v30, %v591_v32 }
  0xe8   : > { %467 = vst.msk [vmem:[%s286_s18] sm:$0x3] %vm465_vm1, %v461_v31 }
  0xe9   : > { %v601_v34 = vrot.slane %v594_v33, %v453_v17 }
  0xeb   : > { %v608_v35 = vrot.slane %v601_v34, %v453_v17 }
  0xed   : > { %610 = vst.msk [vmem:[%s290_s23] sm:$0x3] %vm465_vm1, %v608_v35 }
 0x157   : > { %v424_v46 = vpop.xlane.xlu0 %423 }
 0x158   : > { %426 = vst.msk [vmem:[%s293_s26] sm:$0x1] %vm425_vm2, %v424_v46 }
 0x15c   : > { %v572_v22 = vpop.xlane.xlu1 %571 }
 0x15d   : > { %573 = vst.msk [vmem:[%s296_s29] sm:$0x1] %vm425_vm2, %v572_v22 }
 0x15e PF: > { %s17_s21 = sadd.s32 1, %s804_s21  }
 0x15f   : > { %p14_p4 = scmp.ge.s32.totalorder %s17_s21, 4  }
 0x161   :  { %16 = sbr.rel (!%p14_p4) target bundleno = 1 (0x1), region = 101 }

// kernel: _lambda_.3
= control target key start
LH: loop header
LB: loop body
LE: loop exit
PB: predicated region body
PF: predicated region fallthrough
CT: control target
= control target key end

     0   :  { %8 = vsyncpa [#allocation3], 0  ;;  %s380_s12 = smov 0   ;;  %s418_s0 = inlined_call_operand.vmem [shape: f32[2], index: 0, kind: input, shape index: {}]   ;;  %s419_s1 = inlined_call_operand.vmem [shape: f32[2,1,256], index: 1, kind: input, shape index: {}]   ;;  %s420_s2 = inlined_call_operand.vmem [shape: f32[2,1,256], index: 2, kind: input, shape index: {}]   ;;  %s421_s3 = inlined_call_operand.vmem [shape: f32[2,1,1], index: 3, kind: output, shape index: {}]  }
   0x1 LB: > { %s297_s13 = sadd.s32 4294967295, %s357_s12   ;;  %p299_p0 = scmp.ge.s32.totalorder %s357_s12, 1  ;;  %s357_s12 = sphi %s380_s12, %s14_s12  }
   0x2   : > { %p118_p1 = scmp.lt.s32.totalorder %s357_s12, 3  ;;  %s131_s16 = sshll.u32 %s418_s0, 4  ;;  %s132_s16 = int_to_ptr.vmem [resolvable:$true] %s131_s16 }
   0x3   : > { %p317_p3 = scmp.eq.s32.totalorder %s297_s13, 0  ;;  %s332_s18 = scalar_lea.vmem %s132_s16, 16 }
   0x4   : > { %p391_p2 = pnand %p299_p0, %p118_p1  ;;  %p333_p6 = scmp.ne.s32.totalorder %s132_s16, %s332_s18 }
   0x5   : > { %p340_p10 = scmp.lt.s32.totalorder %s132_s16, %s132_s16  ;;  %p341_p11 = scmp.lt.s32.totalorder %s332_s18, %s332_s18 }
   0x6   : > { %p313_p4 = pneg %p391_p2 }
   0x7   : > { %p342_p12 = por %p341_p11, %p340_p10 }
   0x8   : > { %p314_p5 = pnand %p317_p3, %p313_p4 }
   0xa   : > { %p334_p7 = pneg %p314_p5 }
   0xc   : > { %p335_p8 = pnand %p334_p7, %p333_p6 }
   0xe   : > { %p336_p9 = pneg %p335_p8 }
  0x10   : > { %p343_p13 = pnand %p342_p12, %p336_p9 }
  0x12   : > { %346 = shalt.err (!%p343_p13)
}
  0x13   : > { %s359_s19 = smov [#allocation2]   ;;  %158 = sbr.rel (%p391_p2) target bundleno = 199 (0xc7), region = 32 }
  0x14   : > { %316 = dma.vmem_to_smem (!%p314_p5), %s132_s16, 16, %s359_s19, [#allocation3]  }
  0x18   : > { %352 = dma.done.wait (%p317_p3), [#allocation3], 16  }
  0x19   : > { %354 = vsyncadd (%p317_p3), [#allocation3], 4294967280 }
  0x1a   : > { %164 = sfence }
  0x1b   : > { %p184_p0 = scmp.lt.s32.totalorder %s297_s13, 1  ;;  %s195_s20 = sld [smem:[#allocation2]]  ;;  %v208_v6 = vlaneseq  ;;  %vm218_vm0 = vcmask 1040384   ;;  %vm224_vm1 = vcmask 0  }
  0x1c   : > { %s306_s21 = sld [smem:[#allocation2 + $0x1]] }
  0x1d   : > { %s424_s13 = smov (!%p184_p0, %s297_s13), 1  ;;  %v209_v7 = vshrl.u32 %v208_v6, 7 }
  0x1e   : > { %s304_s22 = sshll.u32 %s424_s13, 1  ;;  %s194_s4 = scalar_lea.vmem %s421_s3, %s424_s13 }
  0x1f   : > { %s187_s25 = scalar_lea.vmem %s419_s1, %s304_s22  ;;  %s191_s28 = scalar_lea.vmem %s420_s2, %s304_s22  ;;  %v210_v11 = vsub.s32 0, %v209_v7  ;;  %v214_v12 = vsub.s32 1, %v209_v7 }
  0x20   : > { %v197_v0 = vld [vmem:[%s187_s25] sm:$0x3] }
  0x21   : > { %v201_v1 = vld [vmem:[%s191_s28] sm:$0x3]  ;;  %v202_v2 = vstv %s195_s20 }
  0x22   : > { %v198_v3 = vstv %s306_s21  ;;  %v203_v4 = vmul.f32 %v202_v2, %v201_v1 }
  0x23   : > { %v199_v5 = vmul.f32 %v198_v3, %v197_v0 }
  0x24   : > { %328 = vtanh.f32 %v203_v4 }
  0x25   : > { %330 = vtanh.f32 %v199_v5 }
  0x31   : > { %v329_v8 = vpop.eup %328 }
  0x32   : > { %v331_v9 = vpop.eup %330 }
  0x33   : > { %v205_v10 = vmul.f32 %v331_v9, %v329_v8 }
  0x35   : > { %v206_v13 = vmul.f32 %v205_v10, %v205_v10 }
  0x37   : > { %v211_v14 = vrot.slane %v206_v13, %v210_v11  ;;  %v215_v15 = vrot.slane %v206_v13, %v214_v12 }
  0x39   : > { %v219_v16 = vsel %vm218_vm0, %v211_v14, 0.0  ;;  %v220_v17 = vsel %vm218_vm0, %v215_v15, 0.0 }
  0x3a   : > { %v221_v18 = vadd.f32 %v220_v17, %v219_v16 }
  0x3c   : > { %222 = vadd.xlane.f32.xlu0 %v221_v18 }
  0xc5   : > { %v223_v19 = vpop.xlane.xlu0 %222 }
  0xc6   : > { %225 = vst.msk [vmem:[%s194_s4] sm:$0x1] %vm224_vm1, %v223_v19 }
  0xc7 PF: > { %s14_s12 = sadd.s32 1, %s357_s12  }
  0xc8   : > { %p11_p1 = scmp.ge.s32.totalorder %s14_s12, 4  }
  0xca   :  { %13 = sbr.rel (!%p11_p1) target bundleno = 1 (0x1), region = 70 }
  0xcf   :  { %243 = vsyncpa [#allocation3], 1 }
  0xd0   :  { %245 = vsyncpa [#allocation3 + $0x1], 1 }

</bundles_post_ra>
